<compile_context>
chip_gen: v6e
topology: v6e:2x2x1
jax: 0.10.0
libtpu: 0.0.40
codegen_flags: <defaults>
</compile_context>

<pallas_src>
import functools

import jax
import jax.numpy as jnp
from jax.experimental import pallas as pl
from jax.experimental.pallas import tpu as pltpu


# --------------------------------------------------------------------------- #
# Crop-bound resolution (Python / PyTorch slice semantics of x[..., a:b]).
# --------------------------------------------------------------------------- #
def _resolve_crop(F: int, min_steps: int, max_steps: int):
    start = max_steps + F if max_steps < 0 else max_steps
    stop = min_steps + F if min_steps < 0 else min_steps
    start = min(max(start, 0), F)
    stop = min(max(stop, 0), F)
    return start, max(stop - start, 0)


def _sublane_align(itemsize: int) -> int:
    # f32 -> 8 rows / vreg, bf16 -> 16, int8/fp8 -> 32.
    return max(8, 32 // max(itemsize, 1))


# --------------------------------------------------------------------------- #
# Path "slice": pipelined full-F read + in-kernel lane slice (narrow crops).
# --------------------------------------------------------------------------- #
def _crop_slice_kernel(x_ref, o_ref, *, start: int, out_f: int):
    x = x_ref[...]                                  # (1, t_tile, F)
    o_ref[...] = x[:, :, start:start + out_f]       # static lane slice


def _choose_time_tile_slice(T: int, F: int, out_f: int, itemsize: int, B: int,
                            target_bytes: int = 4 << 20) -> int:
    """Largest sublane-aligned time tile whose padded in+out VMEM blocks fit
    ~target_bytes (single buffer); guarantees >=2 grid slices when B == 1 so
    v7x's second TensorCore is not idle."""
    align = _sublane_align(itemsize)
    if T <= align:
        return T  # block equal to the full dim is always legal
    lanes = lambda n: ((n + 127) // 128) * 128      # 128-lane padding tax
    per_row = (lanes(F) + lanes(out_f)) * itemsize
    max_rows = max(align, (target_bytes // per_row) // align * align)
    t_cap = T if T % align == 0 else (T // align) * align
    t_tile = min(max_rows, t_cap)
    if B == 1 and t_tile >= T:
        # Split the single batch element in (at least) two time slices.
        half = (T + 1) // 2
        t_tile = max(align, -(-half // align) * align)
    return t_tile


def _crop_pipelined(x3, start, out_f, time_tile):
    B, T, F = x3.shape
    isz = x3.dtype.itemsize
    align = _sublane_align(isz)
    if time_tile is None:
        t_tile = _choose_time_tile_slice(T, F, out_f, isz, B)
    else:
        assert 1 <= time_tile <= T, (time_tile, T)
        assert time_tile % align == 0 or time_tile == T, (
            f"time_tile={time_tile} must be a multiple of the sublane pack "
            f"({align} for itemsize {isz}) or equal to T={T}.")
        t_tile = time_tile
    num_t = pl.cdiv(T, t_tile)

    kernel = functools.partial(_crop_slice_kernel, start=start, out_f=out_f)
    cost = pl.CostEstimate(flops=0, transcendentals=0,
                           bytes_accessed=B * T * (F + out_f) * isz)

    return pl.pallas_call(
        kernel,
        out_shape=jax.ShapeDtypeStruct((B, T, out_f), x3.dtype),
        grid_spec=pltpu.PrefetchScalarGridSpec(
            num_scalar_prefetch=0,
            grid=(B, num_t),
            in_specs=[pl.BlockSpec((1, t_tile, F), lambda b, t: (b, t, 0))],
            out_specs=pl.BlockSpec((1, t_tile, out_f),
                                   lambda b, t: (b, t, 0)),
        ),
        compiler_params=pltpu.CompilerParams(
            dimension_semantics=("parallel", "parallel")),
        cost_estimate=cost,
    )(x3)


# --------------------------------------------------------------------------- #
# Path "dma": direct HBM -> HBM DMA of the cropped window (wide crops).
# --------------------------------------------------------------------------- #
def _crop_dma_kernel(x_hbm, o_hbm, sem, *, t_tile: int, rem: int, start: int,
                     out_f: int, num_t: int, split: bool):
    b = pl.program_id(0)
    t = pl.program_id(1)
    row0 = pl.multiple_of(t * t_tile, t_tile)

    def copy(r0, nrows, slot):
        return pltpu.make_async_copy(
            x_hbm.at[b, pl.ds(r0, nrows), pl.ds(start, out_f)],
            o_hbm.at[b, pl.ds(r0, nrows), :],
            sem.at[slot])

    if split:
        h0 = t_tile // 2
        h1 = t_tile - h0
        c0 = copy(row0, h0, 0)
        c1 = copy(row0 + h0, h1, 1)
        c0.start()
        c1.start()
    else:
        c0 = copy(row0, t_tile, 0)
        c0.start()

    if rem:
        # Static-size remainder DMA, issued only on the last time chunk.
        @pl.when(t == num_t - 1)
        def _():
            cr = copy(num_t * t_tile, rem, 2 if split else 1)
            cr.start()
            cr.wait()

    c0.wait()
    if split:
        c1.wait()


def _crop_direct_dma(x3, start, out_f, time_tile):
    B, T, F = x3.shape
    isz = x3.dtype.itemsize
    if time_tile is None:
        if B >= 2 or T < 2:
            t_tile = T              # one (pair of) DMA(s) per batch element
        else:
            t_tile = T // 2         # B == 1: give both v7x TCs a time slice
    else:
        assert 1 <= time_tile <= T, (time_tile, T)
        t_tile = time_tile
    num_t = T // t_tile
    rem = T - num_t * t_tile
    split = t_tile >= 2
    n_sems = (2 if split else 1) + (1 if rem else 0)

    kernel = functools.partial(_crop_dma_kernel, t_tile=t_tile, rem=rem,
                               start=start, out_f=out_f, num_t=num_t,
                               split=split)
    cost = pl.CostEstimate(flops=0, transcendentals=0,
                           bytes_accessed=2 * B * T * out_f * isz)

    return pl.pallas_call(
        kernel,
        out_shape=jax.ShapeDtypeStruct((B, T, out_f), x3.dtype),
        grid_spec=pltpu.PrefetchScalarGridSpec(
            num_scalar_prefetch=0,
            grid=(B, num_t),
            in_specs=[pl.BlockSpec(memory_space=pl.ANY)],
            out_specs=pl.BlockSpec(memory_space=pl.ANY),
            scratch_shapes=[pltpu.SemaphoreType.DMA((n_sems,))],
        ),
        compiler_params=pltpu.CompilerParams(
            dimension_semantics=("parallel", "parallel"),
            has_side_effects=True),
        cost_estimate=cost,
    )(x3)


# --------------------------------------------------------------------------- #
# Public wrapper: CropCQT forward.
# --------------------------------------------------------------------------- #
def crop_cqt(x: jax.Array, min_steps: int, max_steps: int, *,
             time_tile: int | None = None, mode: str | None = None) -> jax.Array:
    """Pallas equivalent of CropCQT(min_steps, max_steps)(x) for (..., T, F)."""
    *lead, T, F = x.shape
    start, out_f = _resolve_crop(F, min_steps, max_steps)
    assert out_f > 0, (
        f"With input height {F} and output height {out_f}, impossible to "
        f"have a range of {max_steps - min_steps} bins.")

    x3 = x.reshape((-1, T, F))      # flatten leading dims (metadata only)
    B = x3.shape[0]
    isz = x.dtype.itemsize

    if mode is None:
        # Narrow crop rows are DMA-descriptor-overhead-bound; prefer the
        # contiguous full-F read + lane slice there.  Wide crops go direct DMA.
        narrow = (out_f * isz < 512) or (10 * out_f >= 7 * F)
        mode = "slice" if narrow else "dma"
    assert mode in ("slice", "dma"), mode

    if mode == "slice":
        out3 = _crop_pipelined(x3, start, out_f, time_tile)
    else:
        out3 = _crop_direct_dma(x3, start, out_f, time_tile)
    return out3.reshape((*lead, T, out_f))


# --------------------------------------------------------------------------- #
# Self-test.
# --------------------------------------------------------------------------- #
if __name__ == "__main__":
    min_steps = -5   # negative: trims 5 bins from the top (Python slice stop)
    max_steps = 3    # trims 3 bins from the bottom (Python slice start)

    k0, k1, k2, k3, k4 = jax.random.split(jax.random.PRNGKey(0), 5)

    # 1) Demo shape -> narrow-crop "slice" path.
    x = jax.random.normal(k0, (2, 128, 96), dtype=jnp.float32)
    ref = x[..., max_steps:min_steps]
    out = jax.block_until_ready(crop_cqt(x, min_steps, max_steps))
    assert out.shape == ref.shape, (out.shape, ref.shape)
    assert jnp.array_equal(out, ref), "slice path mismatch"

    # 2) Explicit time tile on the slice path (multi-step time grid).
    out_tt = jax.block_until_ready(
        crop_cqt(x, min_steps, max_steps, time_tile=16))
    assert jnp.array_equal(out_tt, ref), "slice path (time_tile=16) mismatch"

    # 3) T not divisible by 8 -> masked partial final time block.
    x_rag = jax.random.normal(k1, (2, 50, 96), dtype=jnp.float32)
    ref_rag = x_rag[..., max_steps:min_steps]
    out_rag = jax.block_until_ready(crop_cqt(x_rag, min_steps, max_steps))
    assert jnp.array_equal(out_rag, ref_rag), "ragged-T slice path mismatch"

    # 4) Wide crop -> direct HBM->HBM DMA path (B >= 2, no remainder).
    x_w = jax.random.normal(k2, (2, 64, 256), dtype=jnp.float32)
    ref_w = x_w[..., 16:-112]
    out_w = jax.block_until_ready(crop_cqt(x_w, -112, 16))
    assert out_w.shape == ref_w.shape, (out_w.shape, ref_w.shape)
    assert jnp.array_equal(out_w, ref_w), "dma path mismatch"

    # 5) DMA path with B == 1 and odd T: megacore time split + remainder DMA.
    x_w1 = jax.random.normal(k3, (1, 33, 256), dtype=jnp.float32)
    ref_w1 = x_w1[..., 16:-112]
    out_w1 = jax.block_until_ready(crop_cqt(x_w1, -112, 16))
    assert jnp.array_equal(out_w1, ref_w1), "dma path (B=1, ragged T) mismatch"

    # 6) Force the DMA path on the narrow crop (A/B coverage) + leading dims.
    x_nd = jax.random.normal(k4, (2, 3, 32, 96), dtype=jnp.float32)
    ref_nd = x_nd[..., max_steps:min_steps]
    out_nd = jax.block_until_ready(
        crop_cqt(x_nd, min_steps, max_steps, mode="dma"))
    assert jnp.array_equal(out_nd, ref_nd), "forced-dma / 4-D input mismatch"

    # 7) bf16 (sublane pack = 16) with ragged T on the slice path.
    x_bf = jax.random.normal(k0, (2, 40, 96), dtype=jnp.bfloat16)
    ref_bf = x_bf[..., max_steps:min_steps]
    out_bf = jax.block_until_ready(crop_cqt(x_bf, min_steps, max_steps))
    assert jnp.array_equal(out_bf, ref_bf), "bf16 slice path mismatch"

    print("KERNEL_OK")
</pallas_src>

<mosaic_0001>
module attributes {stable_mosaic.version = 11 : i64} {
  func.func @_crop_slice_kernel(%arg0: i32, %arg1: i32, %arg2: memref<1x128x96xf32, #tpu.memory_space<vmem>>, %arg3: memref<1x128x88xf32, #tpu.memory_space<vmem>>) attributes {dimension_semantics = [#tpu.dimension_semantics<parallel>, #tpu.dimension_semantics<parallel>], iteration_bounds = array<i64: 2, 1>, scalar_prefetch = 0 : i64, scratch_operands = 0 : i64, tpu.core_type = #tpu.core_type<tc>, window_params = [{transform_indices = @transform_0, window_bounds = array<i64: 1, 128, 96>}, {transform_indices = @transform_1, window_bounds = array<i64: 1, 128, 88>}]} {
    %c0 = arith.constant 0 : index
    %c0_0 = arith.constant 0 : index
    %c0_1 = arith.constant 0 : index
    %0 = vector.load %arg2[%c0, %c0_0, %c0_1] : memref<1x128x96xf32, #tpu.memory_space<vmem>>, vector<1x128x96xf32>
    %1 = vector.extract_strided_slice %0 {offsets = [0, 0, 3], sizes = [1, 128, 88], strides = [1, 1, 1]} : vector<1x128x96xf32> to vector<1x128x88xf32>
    %c0_2 = arith.constant 0 : index
    %c0_3 = arith.constant 0 : index
    %c0_4 = arith.constant 0 : index
    %2 = vector.load %arg3[%c0_2, %c0_3, %c0_4] : memref<1x128x88xf32, #tpu.memory_space<vmem>>, vector<1x128x88xf32>
    tpu.vector_store %arg3[%c0_2, %c0_3, %c0_4], %1 {strides = array<i32>} : memref<1x128x88xf32, #tpu.memory_space<vmem>>, vector<1x128x88xf32>,
    return
  }
  func.func @transform_0(%arg0: i32, %arg1: i32) -> (i32, i32, i32) {
    %c0_i32 = arith.constant 0 : i32
    %c0_i32_0 = arith.constant 0 : i32
    return %arg0, %arg1, %c0_i32 : i32, i32, i32
  }
  func.func @transform_1(%arg0: i32, %arg1: i32) -> (i32, i32, i32) {
    %c0_i32 = arith.constant 0 : i32
    %c0_i32_0 = arith.constant 0 : i32
    return %arg0, %arg1, %c0_i32 : i32, i32, i32
  }
}

</mosaic_0001>

<bundles_post_ra>
// kernel: tpu_custom_call.1
= control target key start
LH: loop header
LB: loop body
LE: loop exit
PB: predicated region body
PF: predicated region fallthrough
CT: control target
= control target key end

     0   :  { %s413_s6 = smov 0   ;;  %s415_s7 = smov 0   ;;  %s505_s0 = inlined_call_operand.vmem [shape: f32[2,128,96], index: 0, kind: input, shape index: {}]   ;;  %s506_s1 = inlined_call_operand.vmem [shape: f32[2,128,88], index: 1, kind: output, shape index: {}]  }
   0x1   :  { %s417_s8 = smov 0  }
   0x2 LB: > { %s23_s9 = sadd.s32 1, %s396_s7  ;;  %p344_p0 = scmp.ge.s32.totalorder %s400_s8, 1  ;;  %s400_s8 = sphi %s417_s8, %s11_s8   ;;  %s396_s7 = sphi %s415_s7, %s508_s7   ;;  %s392_s6 = sphi %s413_s6, %s507_s6  }
   0x3   : > { %p25_p1 = scmp.ge.s32.totalorder %s23_s9, 2  ;;  %p108_p2 = scmp.lt.s32.totalorder %s400_s8, 3 }
   0x5   : > { %s510_s9 = smov (%p25_p1, %s23_s9), 0  ;;  %p109_p3 = pnand %p344_p0, %p108_p2 }
   0x6   : > { %p137_p4 = scmp.lt.s32.totalorder (!%p109_p3), %s392_s6, 1  ;;  %s402_s14 = smov (!%p109_p3), 125  }
   0x7   : > { %112 = sbr.rel (%p109_p3) target bundleno = 160 (0xa0), region = 24 }
   0xc   : > { %s512_s6 = smov (!%p137_p4, %s392_s6), 1  ;;  %vm236_vm0 = vcmask 719872  }
   0xd   : > { %s351_s10 = sshll.u32 %s512_s6, 7 }
   0xe   : > { %s439_s13 = scalar_lea.vmem %s505_s0, %s351_s10  ;;  %s462_s17 = scalar_lea.vmem %s506_s1, %s351_s10 }
   0xf   : > { %v158_v0 = vld [vmem:[%s439_s13 + $0x10] sm:$0xff]  ;;  %v156_v1 = vld [vmem:[%s439_s13] sm:$0xff]  ;;  %v159_v2 = vld [vmem:[%s439_s13 + $0x18] sm:$0xff] }
  0x10   : > { %192 = vrot.lane.b32.xlu1 %v158_v0, %s402_s14  ;;  %188 = vrot.lane.b32.xlu0 %v156_v1, %s402_s14  ;;  %v157_v3 = vld [vmem:[%s439_s13 + $0x8] sm:$0xff]  ;;  %v160_v5 = vld [vmem:[%s439_s13 + $0x20] sm:$0xff] }
  0x11   : > { %v161_v4 = vld [vmem:[%s439_s13 + $0x28] sm:$0xff]  ;;  %v163_v6 = vld [vmem:[%s439_s13 + $0x38] sm:$0xff]  ;;  %v162_v7 = vld [vmem:[%s439_s13 + $0x30] sm:$0xff] }
  0x12   : > { %v165_v8 = vld [vmem:[%s439_s13 + $0x48] sm:$0xff]  ;;  %v164_v9 = vld [vmem:[%s439_s13 + $0x40] sm:$0xff]  ;;  %v167_v10 = vld [vmem:[%s439_s13 + $0x58] sm:$0xff] }
  0x13   : > { %v166_v11 = vld [vmem:[%s439_s13 + $0x50] sm:$0xff]  ;;  %v169_v12 = vld [vmem:[%s439_s13 + $0x68] sm:$0xff]  ;;  %v168_v13 = vld [vmem:[%s439_s13 + $0x60] sm:$0xff] }
  0x14   : > { %194 = vrot.lane.b32.xlu1 %v159_v2, %s402_s14  ;;  %190 = vrot.lane.b32.xlu0 %v157_v3, %s402_s14  ;;  %v171_v14 = vld [vmem:[%s439_s13 + $0x78] sm:$0xff]  ;;  %v170_v15 = vld [vmem:[%s439_s13 + $0x70] sm:$0xff] }
  0x18   : > { %198 = vrot.lane.b32.xlu1 %v161_v4, %s402_s14  ;;  %196 = vrot.lane.b32.xlu0 %v160_v5, %s402_s14 }
  0x1c   : > { %202 = vrot.lane.b32.xlu1 %v163_v6, %s402_s14  ;;  %200 = vrot.lane.b32.xlu0 %v162_v7, %s402_s14 }
  0x20   : > { %206 = vrot.lane.b32.xlu1 %v165_v8, %s402_s14  ;;  %204 = vrot.lane.b32.xlu0 %v164_v9, %s402_s14 }
  0x24   : > { %210 = vrot.lane.b32.xlu1 %v167_v10, %s402_s14  ;;  %208 = vrot.lane.b32.xlu0 %v166_v11, %s402_s14 }
  0x28   : > { %214 = vrot.lane.b32.xlu1 %v169_v12, %s402_s14  ;;  %212 = vrot.lane.b32.xlu0 %v168_v13, %s402_s14 }
  0x2c   : > { %218 = vrot.lane.b32.xlu1 %v171_v14, %s402_s14  ;;  %216 = vrot.lane.b32.xlu0 %v170_v15, %s402_s14 }
  0x82   : > { %v193_v16 = vpop.permute.xlu1 %192  ;;  %v189_v17 = vpop.permute.xlu0 %188 }
  0x83   : > { %239 = vst.msk [vmem:[%s462_s17 + $0x10] sm:$0xff] %vm236_vm0, %v193_v16  ;;  %237 = vst.msk [vmem:[%s462_s17] sm:$0xff] %vm236_vm0, %v189_v17 }
  0x86   : > { %v195_v18 = vpop.permute.xlu1 %194  ;;  %v191_v19 = vpop.permute.xlu0 %190 }
  0x87   : > { %240 = vst.msk [vmem:[%s462_s17 + $0x18] sm:$0xff] %vm236_vm0, %v195_v18  ;;  %238 = vst.msk [vmem:[%s462_s17 + $0x8] sm:$0xff] %vm236_vm0, %v191_v19 }
  0x8a   : > { %v199_v20 = vpop.permute.xlu1 %198  ;;  %v197_v21 = vpop.permute.xlu0 %196 }
  0x8b   : > { %242 = vst.msk [vmem:[%s462_s17 + $0x28] sm:$0xff] %vm236_vm0, %v199_v20  ;;  %241 = vst.msk [vmem:[%s462_s17 + $0x20] sm:$0xff] %vm236_vm0, %v197_v21 }
  0x8e   : > { %v203_v22 = vpop.permute.xlu1 %202  ;;  %v201_v23 = vpop.permute.xlu0 %200 }
  0x8f   : > { %244 = vst.msk [vmem:[%s462_s17 + $0x38] sm:$0xff] %vm236_vm0, %v203_v22  ;;  %243 = vst.msk [vmem:[%s462_s17 + $0x30] sm:$0xff] %vm236_vm0, %v201_v23 }
  0x92   : > { %v207_v24 = vpop.permute.xlu1 %206  ;;  %v205_v25 = vpop.permute.xlu0 %204 }
  0x93   : > { %246 = vst.msk [vmem:[%s462_s17 + $0x48] sm:$0xff] %vm236_vm0, %v207_v24  ;;  %245 = vst.msk [vmem:[%s462_s17 + $0x40] sm:$0xff] %vm236_vm0, %v205_v25 }
  0x96   : > { %v211_v26 = vpop.permute.xlu1 %210  ;;  %v209_v27 = vpop.permute.xlu0 %208 }
  0x97   : > { %248 = vst.msk [vmem:[%s462_s17 + $0x58] sm:$0xff] %vm236_vm0, %v211_v26  ;;  %247 = vst.msk [vmem:[%s462_s17 + $0x50] sm:$0xff] %vm236_vm0, %v209_v27 }
  0x9a   : > { %v215_v28 = vpop.permute.xlu1 %214  ;;  %v213_v29 = vpop.permute.xlu0 %212 }
  0x9b   : > { %250 = vst.msk [vmem:[%s462_s17 + $0x68] sm:$0xff] %vm236_vm0, %v215_v28  ;;  %249 = vst.msk [vmem:[%s462_s17 + $0x60] sm:$0xff] %vm236_vm0, %v213_v29 }
  0x9e   : > { %v219_v30 = vpop.permute.xlu1 %218  ;;  %v217_v31 = vpop.permute.xlu0 %216 }
  0x9f   : > { %252 = vst.msk [vmem:[%s462_s17 + $0x78] sm:$0xff] %vm236_vm0, %v219_v30  ;;  %251 = vst.msk [vmem:[%s462_s17 + $0x70] sm:$0xff] %vm236_vm0, %v217_v31 }
  0xa0 PF: > { %s11_s8 = sadd.s32 1, %s400_s8   ;;  %s507_s6 = smov %s396_s7 }
  0xa1   : > { %p8_p5 = scmp.ge.s32.totalorder %s11_s8, 4   ;;  %s508_s7 = smov %s510_s9 }
  0xa3   :  { %10 = sbr.rel (!%p8_p5) target bundleno = 2 (0x2), region = 54 }

</bundles_post_ra>
